<compile_context>
chip_gen: v6e
topology: v6e:2x2x1
jax: 0.10.0
libtpu: 0.0.40
codegen_flags: <defaults>
</compile_context>

<pallas_src>
import math

import jax
import jax.numpy as jnp
import numpy as np
from jax.experimental import pallas as pl
from jax.experimental.pallas import tpu as pltpu


# ----------------------------- config -----------------------------------
B = 2            # batch
S = 8            # seq len
D = 32           # model dim
H = 4            # n_heads
HKV = 2          # n_kv_heads
HD = D // H      # head_dim = 8
HF = HD // 2     # 4
N_REP = H // HKV
MULTIPLE_OF = 32
EPS = 1e-6

QW = H * HD      # 32  (q width; k/v are replicated to this width too)
HW = QW // 2     # 16  (width of the "reals" half in rotate-half layout)

# FeedForward hidden dim, exactly as in the PyTorch __init__
_hid = int(2 * (4 * D) / 3)
FFN_HID = MULTIPLE_OF * ((_hid + MULTIPLE_OF - 1) // MULTIPLE_OF)   # 96


# ----------------------------- kernel ------------------------------------
def transformer_block_kernel(
    x_ref,          # (B*S, D)   float32
    wqkv_ref,       # (D, 3*QW)  bf16   fused q|k_rep|v_rep (q,k rotate-half layout)
    wo_ref,         # (QW, D)    bf16
    w13_ref,        # (D, 2*FFN_HID) bf16  fused w1|w3
    w2_ref,         # (FFN_HID, D)   bf16
    gattn_ref,      # (1, D)     float32
    gffn_ref,       # (1, D)     float32
    cos_ref,        # (B*S, QW)  float32 (shared by q and replicated k)
    sin_ref,        # (B*S, QW)  float32 ([-sin | +sin] halves)
    mask_ref,       # (B*S, B*S) float32 additive block-diag causal mask
    out_ref,        # (B*S, D)   float32
):
    x = x_ref[...]                                 # (BS, D) float32
    BS = x.shape[0]                                # static python int

    def rmsnorm(v, g):
        ms = jnp.mean(v * v, axis=-1, keepdims=True)
        return v * jax.lax.rsqrt(ms + EPS) * g

    # ---- attention branch ----
    xn = rmsnorm(x, gattn_ref[...])

    qkv = jnp.dot(xn.astype(jnp.bfloat16), wqkv_ref[...],
                  preferred_element_type=jnp.float32)          # (BS, 3*QW) f32
    q = qkv[:, :QW]                                            # pre-scaled by 1/sqrt(HD)
    k = qkv[:, QW:2 * QW]                                      # GQA-replicated
    v = qkv[:, 2 * QW:]                                        # GQA-replicated

    cos = cos_ref[...]
    sin = sin_ref[...]

    # rotate-half: single half-width swap (global [reals | imags] layout).
    def half_swap(t):
        return jnp.concatenate([t[:, HW:], t[:, :HW]], axis=-1)

    q = q * cos + half_swap(q) * sin
    k = k * cos + half_swap(k) * sin

    mask = mask_ref[...]                                       # (BS, BS)
    dn = (((1,), (1,)), ((), ()))                              # contract dim 1 x dim 1

    # Per-head raw scores; head h's dims are the union of its "reals" slice and
    # its "imags" slice, so two small dot_generals + add (no transposes, no
    # concats). One softmax over the stacked (H*BS, BS) tensor.
    scores = []
    for h in range(H):
        r0 = h * HF
        i0 = HW + h * HF
        sr = jax.lax.dot_general(q[:, r0:r0 + HF], k[:, r0:r0 + HF], dn,
                                 preferred_element_type=jnp.float32)
        si = jax.lax.dot_general(q[:, i0:i0 + HF], k[:, i0:i0 + HF], dn,
                                 preferred_element_type=jnp.float32)
        scores.append(sr + si + mask)
    s = jnp.concatenate(scores, axis=0)                        # (H*BS, BS)
    s = s - jnp.max(s, axis=-1, keepdims=True)
    p = jnp.exp(s)
    p = p * pl.reciprocal(jnp.sum(p, axis=-1, keepdims=True), approx=True)

    # Per-head PV matmuls; head outputs stay in registers (no VMEM scratch).
    outs = []
    for h in range(H):
        ph = p[h * BS:(h + 1) * BS]                            # (BS, BS)
        vh = v[:, h * HD:(h + 1) * HD]                         # (BS, HD)
        outs.append(jnp.dot(ph, vh, preferred_element_type=jnp.float32))
    attn = jnp.dot(jnp.concatenate(outs, axis=-1).astype(jnp.bfloat16),
                   wo_ref[...], preferred_element_type=jnp.float32)   # (BS, D)
    h_res = x + attn                               # dropout(training=False) == id

    # ---- feed-forward branch (SwiGLU), fused w1|w3 ----
    hn = rmsnorm(h_res, gffn_ref[...])
    gu = jnp.dot(hn.astype(jnp.bfloat16), w13_ref[...],
                 preferred_element_type=jnp.float32)           # (BS, 2*FFN_HID)
    g = gu[:, :FFN_HID]
    u = gu[:, FFN_HID:]
    ffn = jnp.dot((g * jax.nn.sigmoid(g) * u).astype(jnp.bfloat16), w2_ref[...],
                  preferred_element_type=jnp.float32)

    out_ref[...] = h_res + ffn                     # full tile, one statement


# ----------------------------- one-time precompute --------------------------
def precompute_block_inputs(params, cos, sin, mask):
    """Runs ONCE per parameter set (NumPy, off the per-call path)."""
    wq, wk, wv, wo, w1, w2, w3, gattn, gffn = [np.asarray(p, np.float32) for p in params]
    cos = np.asarray(cos, np.float32)          # (S, HF)
    sin = np.asarray(sin, np.float32)
    mask = np.asarray(mask, np.float32)        # (S, S)

    # Global rotate-half column layout: [reals of all heads | imags of all heads].
    q_perm = np.concatenate([
        np.array([h * HD + 2 * j for h in range(H) for j in range(HF)]),
        np.array([h * HD + 2 * j + 1 for h in range(H) for j in range(HF)])])
    # GQA replication baked in: q-head h reads kv-head h // N_REP.
    k_perm = np.concatenate([
        np.array([(h // N_REP) * HD + 2 * j for h in range(H) for j in range(HF)]),
        np.array([(h // N_REP) * HD + 2 * j + 1 for h in range(H) for j in range(HF)])])
    v_perm = np.array([(h // N_REP) * HD + d for h in range(H) for d in range(HD)])

    wq_p = wq[:, q_perm] * (1.0 / math.sqrt(HD))   # fold 1/sqrt(head_dim) into wq
    wqkv = np.concatenate([wq_p, wk[:, k_perm], wv[:, v_perm]], axis=1)  # (D, 3*QW)
    w13 = np.concatenate([w1, w3], axis=1)                               # (D, 2*FFN_HID)

    # RoPE tables in global rotate-half layout; k (replicated) shares q's tables.
    cos_half = np.tile(cos, (1, H))                                   # (S, HW)
    sin_half = np.tile(sin, (1, H))
    cos_full = np.concatenate([cos_half, cos_half], axis=-1)          # (S, QW)
    sin_full = np.concatenate([-sin_half, sin_half], axis=-1)
    cos_bs = np.tile(cos_full, (B, 1)).astype(np.float32)             # (B*S, QW)
    sin_bs = np.tile(sin_full, (B, 1)).astype(np.float32)

    # Block-diagonal causal mask for the folded batch (un-tiled per head).
    neg = np.float32(-1e30)
    same = np.kron(np.eye(B, dtype=np.float32), np.ones((S, S), np.float32))
    mask_bs = np.where(same > 0, np.tile(mask, (B, B)), neg).astype(np.float32)

    bf = lambda a: jnp.asarray(a, dtype=jnp.bfloat16)
    return (bf(wqkv), bf(wo), bf(w13), bf(w2),
            jnp.asarray(gattn.reshape(1, D)), jnp.asarray(gffn.reshape(1, D)),
            jnp.asarray(cos_bs), jnp.asarray(sin_bs), jnp.asarray(mask_bs))


# ----------------------------- per-call wrapper -----------------------------
@jax.jit
def transformer_block(x, prepped):
    """x: (B, S, D) float32. `prepped` = precompute_block_inputs(...)."""
    wqkv, wo, w13, w2, gattn2, gffn2, cos_bs, sin_bs, mask_bs = prepped
    B_, S_, D_ = x.shape
    assert (B_, S_, D_) == (B, S, D), "shape must match the compiled config"
    BS = B_ * S_

    x2 = x.reshape(BS, D_)
    inputs = (x2, wqkv, wo, w13, w2, gattn2, gffn2, cos_bs, sin_bs, mask_bs)

    def full_spec(a):
        return pl.BlockSpec(a.shape, lambda i: (0,) * a.ndim)

    # Batch folded -> single grid step.  Do NOT split across v7x's two
    # TensorCores at this size: duplicated weight/rope/mask DMA + per-core
    # launch overhead exceed the sub-microsecond per-batch compute.
    out2 = pl.pallas_call(
        transformer_block_kernel,
        out_shape=jax.ShapeDtypeStruct((BS, D_), jnp.float32),
        grid_spec=pltpu.PrefetchScalarGridSpec(
            num_scalar_prefetch=0,
            grid=(1,),
            in_specs=[full_spec(a) for a in inputs],
            out_specs=pl.BlockSpec((BS, D_), lambda i: (0, 0)),
        ),
        compiler_params=pltpu.CompilerParams(
            dimension_semantics=("arbitrary",)),
    )(*inputs)
    return out2.reshape(B_, S_, D_)


# ----------------------------- pure-JAX reference --------------------------
def reference_block(x, params, cos, sin, mask):
    wq, wk, wv, wo, w1, w2, w3, gattn, gffn = params

    def rmsnorm(v, g):
        ms = jnp.mean(v * v, axis=-1, keepdims=True)
        return v * jax.lax.rsqrt(ms + EPS) * g

    def rope(t):  # t: (B, S, nh, HD)
        tp = t.reshape(*t.shape[:-1], HD // 2, 2)
        tr, ti = tp[..., 0], tp[..., 1]
        c = cos[None, :, None, :]
        s = sin[None, :, None, :]
        out_r = tr * c - ti * s
        out_i = ti * c + tr * s
        return jnp.stack([out_r, out_i], axis=-1).reshape(t.shape)

    xn = rmsnorm(x, gattn)
    q = (xn @ wq).reshape(B, S, H, HD)
    k = (xn @ wk).reshape(B, S, HKV, HD)
    v = (xn @ wv).reshape(B, S, HKV, HD)
    q, k = rope(q), rope(k)

    keys = jnp.repeat(k, N_REP, axis=2)
    values = jnp.repeat(v, N_REP, axis=2)

    qt = q.transpose(0, 2, 1, 3)
    kt = keys.transpose(0, 2, 1, 3)
    vt = values.transpose(0, 2, 1, 3)

    scores = jnp.einsum("bhqd,bhkd->bhqk", qt, kt) / math.sqrt(HD) + mask
    p = jax.nn.softmax(scores, axis=-1)
    o = jnp.einsum("bhqk,bhkd->bhqd", p, vt)
    o = o.transpose(0, 2, 1, 3).reshape(B, S, H * HD)
    attn = o @ wo
    h = x + attn

    hn = rmsnorm(h, gffn)
    ffn = (jax.nn.silu(hn @ w1) * (hn @ w3)) @ w2
    return h + ffn


# ----------------------------- main ----------------------------------------
if __name__ == "__main__":
    key = jax.random.PRNGKey(0)
    keys = jax.random.split(key, 9)

    scale = 0.02
    wq = scale * jax.random.normal(keys[0], (D, H * HD), jnp.float32)
    wk = scale * jax.random.normal(keys[1], (D, HKV * HD), jnp.float32)
    wv = scale * jax.random.normal(keys[2], (D, HKV * HD), jnp.float32)
    wo = scale * jax.random.normal(keys[3], (H * HD, D), jnp.float32)
    w1 = scale * jax.random.normal(keys[4], (D, FFN_HID), jnp.float32)
    w2 = scale * jax.random.normal(keys[5], (FFN_HID, D), jnp.float32)
    w3 = scale * jax.random.normal(keys[6], (D, FFN_HID), jnp.float32)
    gattn = jnp.ones((D,), jnp.float32)
    gffn = jnp.ones((D,), jnp.float32)
    params = (wq, wk, wv, wo, w1, w2, w3, gattn, gffn)

    x = jax.random.normal(keys[7], (B, S, D), jnp.float32)

    # freqs_cis (rope tables) and causal mask
    inv_freq = 1.0 / (10000.0 ** (jnp.arange(0, HD, 2, dtype=jnp.float32) / HD))
    angles = jnp.arange(S, dtype=jnp.float32)[:, None] * inv_freq[None, :]  # (S, HD//2)
    cos, sin = jnp.cos(angles), jnp.sin(angles)
    mask = jnp.triu(jnp.full((S, S), -1e30, jnp.float32), k=1)

    # One-time prep (hoisted off the per-forward path).
    prepped = precompute_block_inputs(params, cos, sin, mask)

    out = transformer_block(x, prepped)
    out = jax.block_until_ready(out)

    ref = reference_block(x, params, cos, sin, mask)
    # bf16 MXU operands + approx softmax reciprocal -> slightly looser atol.
    np.testing.assert_allclose(np.asarray(out), np.asarray(ref),
                               rtol=1e-2, atol=3e-3)
    print("KERNEL_OK")
</pallas_src>

<mosaic_0001>
module attributes {stable_mosaic.version = 11 : i64} {
  func.func @transformer_block_kernel(%arg0: i32, %arg1: memref<16x32xf32, #tpu.memory_space<vmem>>, %arg2: memref<32x96xbf16, #tpu.memory_space<vmem>>, %arg3: memref<32x32xbf16, #tpu.memory_space<vmem>>, %arg4: memref<32x192xbf16, #tpu.memory_space<vmem>>, %arg5: memref<96x32xbf16, #tpu.memory_space<vmem>>, %arg6: memref<1x32xf32, #tpu.memory_space<vmem>>, %arg7: memref<1x32xf32, #tpu.memory_space<vmem>>, %arg8: memref<16x32xf32, #tpu.memory_space<vmem>>, %arg9: memref<16x32xf32, #tpu.memory_space<vmem>>, %arg10: memref<16x16xf32, #tpu.memory_space<vmem>>, %arg11: memref<16x32xf32, #tpu.memory_space<vmem>>) attributes {dimension_semantics = [#tpu.dimension_semantics<arbitrary>], iteration_bounds = array<i64: 1>, scalar_prefetch = 0 : i64, scratch_operands = 0 : i64, tpu.core_type = #tpu.core_type<tc>, window_params = [{pipeline_mode = #tpu.pipeline_mode<synchronous>, transform_indices = @transform_0, window_bounds = array<i64: 16, 32>}, {pipeline_mode = #tpu.pipeline_mode<synchronous>, transform_indices = @transform_1, window_bounds = array<i64: 32, 96>}, {pipeline_mode = #tpu.pipeline_mode<synchronous>, transform_indices = @transform_2, window_bounds = array<i64: 32, 32>}, {pipeline_mode = #tpu.pipeline_mode<synchronous>, transform_indices = @transform_3, window_bounds = array<i64: 32, 192>}, {pipeline_mode = #tpu.pipeline_mode<synchronous>, transform_indices = @transform_4, window_bounds = array<i64: 96, 32>}, {pipeline_mode = #tpu.pipeline_mode<synchronous>, transform_indices = @transform_5, window_bounds = array<i64: 1, 32>}, {pipeline_mode = #tpu.pipeline_mode<synchronous>, transform_indices = @transform_6, window_bounds = array<i64: 1, 32>}, {pipeline_mode = #tpu.pipeline_mode<synchronous>, transform_indices = @transform_7, window_bounds = array<i64: 16, 32>}, {pipeline_mode = #tpu.pipeline_mode<synchronous>, transform_indices = @transform_8, window_bounds = array<i64: 16, 32>}, {pipeline_mode = #tpu.pipeline_mode<synchronous>, transform_indices = @transform_9, window_bounds = array<i64: 16, 16>}, {pipeline_mode = #tpu.pipeline_mode<synchronous>, transform_indices = @transform_10, window_bounds = array<i64: 16, 32>}]} {
    %c0 = arith.constant 0 : index
    %c0_0 = arith.constant 0 : index
    %0 = vector.load %arg1[%c0, %c0_0] : memref<16x32xf32, #tpu.memory_space<vmem>>, vector<16x32xf32>
    %c0_1 = arith.constant 0 : index
    %c0_2 = arith.constant 0 : index
    %1 = vector.load %arg6[%c0_1, %c0_2] : memref<1x32xf32, #tpu.memory_space<vmem>>, vector<1x32xf32>
    %2 = arith.mulf %0, %0 : vector<16x32xf32>
    %cst = arith.constant dense<0.000000e+00> : vector<16xf32>
    %3 = vector.multi_reduction <add>, %2, %cst [1] : vector<16x32xf32> to vector<16xf32>
    %4 = vector.shape_cast %3 : vector<16xf32> to vector<16x1xf32>
    %cst_3 = arith.constant 3.200000e+01 : f32
    %5 = vector.broadcast %cst_3 : f32 to vector<16x1xf32>
    %6 = arith.divf %4, %5 : vector<16x1xf32>
    %cst_4 = arith.constant 9.99999997E-7 : f32
    %7 = vector.broadcast %cst_4 : f32 to vector<16x1xf32>
    %8 = arith.addf %6, %7 : vector<16x1xf32>
    %9 = math.rsqrt %8 : vector<16x1xf32>
    %10 = vector.broadcast %9 : vector<16x1xf32> to vector<16x32xf32>
    %11 = arith.mulf %0, %10 : vector<16x32xf32>
    %12 = vector.broadcast %1 : vector<1x32xf32> to vector<16x32xf32>
    %13 = arith.mulf %11, %12 : vector<16x32xf32>
    %14 = arith.truncf %13 : vector<16x32xf32> to vector<16x32xbf16>
    %c0_5 = arith.constant 0 : index
    %c0_6 = arith.constant 0 : index
    %15 = vector.load %arg2[%c0_5, %c0_6] : memref<32x96xbf16, #tpu.memory_space<vmem>>, vector<32x96xbf16>
    %cst_7 = arith.constant dense<0.000000e+00> : vector<16x96xf32>
    %16 = tpu.matmul %14, %15, %cst_7 {dimension_numbers = #tpu.dot_dimension_numbers<[1], [0], [0], [1], [0, 0, 1, 1], [], []>} : vector<16x32xbf16>, vector<32x96xbf16>, vector<16x96xf32> -> vector<16x96xf32>
    %17 = vector.extract_strided_slice %16 {offsets = [0, 0], sizes = [16, 32], strides = [1, 1]} : vector<16x96xf32> to vector<16x32xf32>
    %18 = vector.extract_strided_slice %16 {offsets = [0, 32], sizes = [16, 32], strides = [1, 1]} : vector<16x96xf32> to vector<16x32xf32>
    %19 = vector.extract_strided_slice %16 {offsets = [0, 64], sizes = [16, 32], strides = [1, 1]} : vector<16x96xf32> to vector<16x32xf32>
    %c0_8 = arith.constant 0 : index
    %c0_9 = arith.constant 0 : index
    %20 = vector.load %arg8[%c0_8, %c0_9] : memref<16x32xf32, #tpu.memory_space<vmem>>, vector<16x32xf32>
    %c0_10 = arith.constant 0 : index
    %c0_11 = arith.constant 0 : index
    %21 = vector.load %arg9[%c0_10, %c0_11] : memref<16x32xf32, #tpu.memory_space<vmem>>, vector<16x32xf32>
    %22 = arith.mulf %17, %20 : vector<16x32xf32>
    %23 = vector.extract_strided_slice %17 {offsets = [0, 16], sizes = [16, 16], strides = [1, 1]} : vector<16x32xf32> to vector<16x16xf32>
    %24 = vector.extract_strided_slice %17 {offsets = [0, 0], sizes = [16, 16], strides = [1, 1]} : vector<16x32xf32> to vector<16x16xf32>
    %25 = tpu.concatenate %23, %24 in 1 : vector<16x16xf32>, vector<16x16xf32> -> vector<16x32xf32>
    %26 = arith.mulf %25, %21 : vector<16x32xf32>
    %27 = arith.addf %22, %26 : vector<16x32xf32>
    %28 = arith.mulf %18, %20 : vector<16x32xf32>
    %29 = vector.extract_strided_slice %18 {offsets = [0, 16], sizes = [16, 16], strides = [1, 1]} : vector<16x32xf32> to vector<16x16xf32>
    %30 = vector.extract_strided_slice %18 {offsets = [0, 0], sizes = [16, 16], strides = [1, 1]} : vector<16x32xf32> to vector<16x16xf32>
    %31 = tpu.concatenate %29, %30 in 1 : vector<16x16xf32>, vector<16x16xf32> -> vector<16x32xf32>
    %32 = arith.mulf %31, %21 : vector<16x32xf32>
    %33 = arith.addf %28, %32 : vector<16x32xf32>
    %c0_12 = arith.constant 0 : index
    %c0_13 = arith.constant 0 : index
    %34 = vector.load %arg10[%c0_12, %c0_13] : memref<16x16xf32, #tpu.memory_space<vmem>>, vector<16x16xf32>
    %35 = vector.extract_strided_slice %27 {offsets = [0, 0], sizes = [16, 4], strides = [1, 1]} : vector<16x32xf32> to vector<16x4xf32>
    %36 = vector.extract_strided_slice %33 {offsets = [0, 0], sizes = [16, 4], strides = [1, 1]} : vector<16x32xf32> to vector<16x4xf32>
    %cst_14 = arith.constant dense<0.000000e+00> : vector<16x16xf32>
    %37 = tpu.matmul %35, %36, %cst_14 {dimension_numbers = #tpu.dot_dimension_numbers<[1], [1], [0], [0], [0, 0, 1, 0], [], []>} : vector<16x4xf32>, vector<16x4xf32>, vector<16x16xf32> -> vector<16x16xf32>
    %38 = vector.extract_strided_slice %27 {offsets = [0, 16], sizes = [16, 4], strides = [1, 1]} : vector<16x32xf32> to vector<16x4xf32>
    %39 = vector.extract_strided_slice %33 {offsets = [0, 16], sizes = [16, 4], strides = [1, 1]} : vector<16x32xf32> to vector<16x4xf32>
    %cst_15 = arith.constant dense<0.000000e+00> : vector<16x16xf32>
    %40 = tpu.matmul %38, %39, %cst_15 {dimension_numbers = #tpu.dot_dimension_numbers<[1], [1], [0], [0], [0, 0, 1, 0], [], []>} : vector<16x4xf32>, vector<16x4xf32>, vector<16x16xf32> -> vector<16x16xf32>
    %41 = arith.addf %37, %40 : vector<16x16xf32>
    %42 = arith.addf %41, %34 : vector<16x16xf32>
    %43 = vector.extract_strided_slice %27 {offsets = [0, 4], sizes = [16, 4], strides = [1, 1]} : vector<16x32xf32> to vector<16x4xf32>
    %44 = vector.extract_strided_slice %33 {offsets = [0, 4], sizes = [16, 4], strides = [1, 1]} : vector<16x32xf32> to vector<16x4xf32>
    %cst_16 = arith.constant dense<0.000000e+00> : vector<16x16xf32>
    %45 = tpu.matmul %43, %44, %cst_16 {dimension_numbers = #tpu.dot_dimension_numbers<[1], [1], [0], [0], [0, 0, 1, 0], [], []>} : vector<16x4xf32>, vector<16x4xf32>, vector<16x16xf32> -> vector<16x16xf32>
    %46 = vector.extract_strided_slice %27 {offsets = [0, 20], sizes = [16, 4], strides = [1, 1]} : vector<16x32xf32> to vector<16x4xf32>
    %47 = vector.extract_strided_slice %33 {offsets = [0, 20], sizes = [16, 4], strides = [1, 1]} : vector<16x32xf32> to vector<16x4xf32>
    %cst_17 = arith.constant dense<0.000000e+00> : vector<16x16xf32>
    %48 = tpu.matmul %46, %47, %cst_17 {dimension_numbers = #tpu.dot_dimension_numbers<[1], [1], [0], [0], [0, 0, 1, 0], [], []>} : vector<16x4xf32>, vector<16x4xf32>, vector<16x16xf32> -> vector<16x16xf32>
    %49 = arith.addf %45, %48 : vector<16x16xf32>
    %50 = arith.addf %49, %34 : vector<16x16xf32>
    %51 = vector.extract_strided_slice %27 {offsets = [0, 8], sizes = [16, 4], strides = [1, 1]} : vector<16x32xf32> to vector<16x4xf32>
    %52 = vector.extract_strided_slice %33 {offsets = [0, 8], sizes = [16, 4], strides = [1, 1]} : vector<16x32xf32> to vector<16x4xf32>
    %cst_18 = arith.constant dense<0.000000e+00> : vector<16x16xf32>
    %53 = tpu.matmul %51, %52, %cst_18 {dimension_numbers = #tpu.dot_dimension_numbers<[1], [1], [0], [0], [0, 0, 1, 0], [], []>} : vector<16x4xf32>, vector<16x4xf32>, vector<16x16xf32> -> vector<16x16xf32>
    %54 = vector.extract_strided_slice %27 {offsets = [0, 24], sizes = [16, 4], strides = [1, 1]} : vector<16x32xf32> to vector<16x4xf32>
    %55 = vector.extract_strided_slice %33 {offsets = [0, 24], sizes = [16, 4], strides = [1, 1]} : vector<16x32xf32> to vector<16x4xf32>
    %cst_19 = arith.constant dense<0.000000e+00> : vector<16x16xf32>
    %56 = tpu.matmul %54, %55, %cst_19 {dimension_numbers = #tpu.dot_dimension_numbers<[1], [1], [0], [0], [0, 0, 1, 0], [], []>} : vector<16x4xf32>, vector<16x4xf32>, vector<16x16xf32> -> vector<16x16xf32>
    %57 = arith.addf %53, %56 : vector<16x16xf32>
    %58 = arith.addf %57, %34 : vector<16x16xf32>
    %59 = vector.extract_strided_slice %27 {offsets = [0, 12], sizes = [16, 4], strides = [1, 1]} : vector<16x32xf32> to vector<16x4xf32>
    %60 = vector.extract_strided_slice %33 {offsets = [0, 12], sizes = [16, 4], strides = [1, 1]} : vector<16x32xf32> to vector<16x4xf32>
    %cst_20 = arith.constant dense<0.000000e+00> : vector<16x16xf32>
    %61 = tpu.matmul %59, %60, %cst_20 {dimension_numbers = #tpu.dot_dimension_numbers<[1], [1], [0], [0], [0, 0, 1, 0], [], []>} : vector<16x4xf32>, vector<16x4xf32>, vector<16x16xf32> -> vector<16x16xf32>
    %62 = vector.extract_strided_slice %27 {offsets = [0, 28], sizes = [16, 4], strides = [1, 1]} : vector<16x32xf32> to vector<16x4xf32>
    %63 = vector.extract_strided_slice %33 {offsets = [0, 28], sizes = [16, 4], strides = [1, 1]} : vector<16x32xf32> to vector<16x4xf32>
    %cst_21 = arith.constant dense<0.000000e+00> : vector<16x16xf32>
    %64 = tpu.matmul %62, %63, %cst_21 {dimension_numbers = #tpu.dot_dimension_numbers<[1], [1], [0], [0], [0, 0, 1, 0], [], []>} : vector<16x4xf32>, vector<16x4xf32>, vector<16x16xf32> -> vector<16x16xf32>
    %65 = arith.addf %61, %64 : vector<16x16xf32>
    %66 = arith.addf %65, %34 : vector<16x16xf32>
    %67 = tpu.concatenate %42, %50, %58, %66 in 0 : vector<16x16xf32>, vector<16x16xf32>, vector<16x16xf32>, vector<16x16xf32> -> vector<64x16xf32>
    %cst_22 = arith.constant dense<0xFF800000> : vector<64xf32>
    %68 = vector.multi_reduction <maximumf>, %67, %cst_22 [1] : vector<64x16xf32> to vector<64xf32>
    %69 = vector.shape_cast %68 : vector<64xf32> to vector<64x1xf32>
    %70 = vector.broadcast %69 : vector<64x1xf32> to vector<64x16xf32>
    %71 = arith.subf %67, %70 : vector<64x16xf32>
    %72 = math.exp %71 : vector<64x16xf32>
    %cst_23 = arith.constant dense<0.000000e+00> : vector<64xf32>
    %73 = vector.multi_reduction <add>, %72, %cst_23 [1] : vector<64x16xf32> to vector<64xf32>
    %74 = vector.shape_cast %73 : vector<64xf32> to vector<64x1xf32>
    %75 = tpu.reciprocal %74 {approx = true} : vector<64x1xf32> -> vector<64x1xf32>
    %76 = vector.broadcast %75 : vector<64x1xf32> to vector<64x16xf32>
    %77 = arith.mulf %72, %76 : vector<64x16xf32>
    %78 = vector.extract_strided_slice %77 {offsets = [0, 0], sizes = [16, 16], strides = [1, 1]} : vector<64x16xf32> to vector<16x16xf32>
    %79 = vector.extract_strided_slice %19 {offsets = [0, 0], sizes = [16, 8], strides = [1, 1]} : vector<16x32xf32> to vector<16x8xf32>
    %cst_24 = arith.constant dense<0.000000e+00> : vector<16x8xf32>
    %80 = tpu.matmul %78, %79, %cst_24 {dimension_numbers = #tpu.dot_dimension_numbers<[1], [0], [0], [1], [0, 0, 1, 1], [], []>} : vector<16x16xf32>, vector<16x8xf32>, vector<16x8xf32> -> vector<16x8xf32>
    %81 = vector.extract_strided_slice %77 {offsets = [16, 0], sizes = [16, 16], strides = [1, 1]} : vector<64x16xf32> to vector<16x16xf32>
    %82 = vector.extract_strided_slice %19 {offsets = [0, 8], sizes = [16, 8], strides = [1, 1]} : vector<16x32xf32> to vector<16x8xf32>
    %cst_25 = arith.constant dense<0.000000e+00> : vector<16x8xf32>
    %83 = tpu.matmul %81, %82, %cst_25 {dimension_numbers = #tpu.dot_dimension_numbers<[1], [0], [0], [1], [0, 0, 1, 1], [], []>} : vector<16x16xf32>, vector<16x8xf32>, vector<16x8xf32> -> vector<16x8xf32>
    %84 = vector.extract_strided_slice %77 {offsets = [32, 0], sizes = [16, 16], strides = [1, 1]} : vector<64x16xf32> to vector<16x16xf32>
    %85 = vector.extract_strided_slice %19 {offsets = [0, 16], sizes = [16, 8], strides = [1, 1]} : vector<16x32xf32> to vector<16x8xf32>
    %cst_26 = arith.constant dense<0.000000e+00> : vector<16x8xf32>
    %86 = tpu.matmul %84, %85, %cst_26 {dimension_numbers = #tpu.dot_dimension_numbers<[1], [0], [0], [1], [0, 0, 1, 1], [], []>} : vector<16x16xf32>, vector<16x8xf32>, vector<16x8xf32> -> vector<16x8xf32>
    %87 = vector.extract_strided_slice %77 {offsets = [48, 0], sizes = [16, 16], strides = [1, 1]} : vector<64x16xf32> to vector<16x16xf32>
    %88 = vector.extract_strided_slice %19 {offsets = [0, 24], sizes = [16, 8], strides = [1, 1]} : vector<16x32xf32> to vector<16x8xf32>
    %cst_27 = arith.constant dense<0.000000e+00> : vector<16x8xf32>
    %89 = tpu.matmul %87, %88, %cst_27 {dimension_numbers = #tpu.dot_dimension_numbers<[1], [0], [0], [1], [0, 0, 1, 1], [], []>} : vector<16x16xf32>, vector<16x8xf32>, vector<16x8xf32> -> vector<16x8xf32>
    %90 = tpu.concatenate %80, %83, %86, %89 in 1 : vector<16x8xf32>, vector<16x8xf32>, vector<16x8xf32>, vector<16x8xf32> -> vector<16x32xf32>
    %91 = arith.truncf %90 : vector<16x32xf32> to vector<16x32xbf16>
    %c0_28 = arith.constant 0 : index
    %c0_29 = arith.constant 0 : index
    %92 = vector.load %arg3[%c0_28, %c0_29] : memref<32x32xbf16, #tpu.memory_space<vmem>>, vector<32x32xbf16>
    %cst_30 = arith.constant dense<0.000000e+00> : vector<16x32xf32>
    %93 = tpu.matmul %91, %92, %cst_30 {dimension_numbers = #tpu.dot_dimension_numbers<[1], [0], [0], [1], [0, 0, 1, 1], [], []>} : vector<16x32xbf16>, vector<32x32xbf16>, vector<16x32xf32> -> vector<16x32xf32>
    %94 = arith.addf %0, %93 : vector<16x32xf32>
    %c0_31 = arith.constant 0 : index
    %c0_32 = arith.constant 0 : index
    %95 = vector.load %arg7[%c0_31, %c0_32] : memref<1x32xf32, #tpu.memory_space<vmem>>, vector<1x32xf32>
    %96 = arith.mulf %94, %94 : vector<16x32xf32>
    %cst_33 = arith.constant dense<0.000000e+00> : vector<16xf32>
    %97 = vector.multi_reduction <add>, %96, %cst_33 [1] : vector<16x32xf32> to vector<16xf32>
    %98 = vector.shape_cast %97 : vector<16xf32> to vector<16x1xf32>
    %cst_34 = arith.constant 3.200000e+01 : f32
    %99 = vector.broadcast %cst_34 : f32 to vector<16x1xf32>
    %100 = arith.divf %98, %99 : vector<16x1xf32>
    %cst_35 = arith.constant 9.99999997E-7 : f32
    %101 = vector.broadcast %cst_35 : f32 to vector<16x1xf32>
    %102 = arith.addf %100, %101 : vector<16x1xf32>
    %103 = math.rsqrt %102 : vector<16x1xf32>
    %104 = vector.broadcast %103 : vector<16x1xf32> to vector<16x32xf32>
    %105 = arith.mulf %94, %104 : vector<16x32xf32>
    %106 = vector.broadcast %95 : vector<1x32xf32> to vector<16x32xf32>
    %107 = arith.mulf %105, %106 : vector<16x32xf32>
    %108 = arith.truncf %107 : vector<16x32xf32> to vector<16x32xbf16>
    %c0_36 = arith.constant 0 : index
    %c0_37 = arith.constant 0 : index
    %109 = vector.load %arg4[%c0_36, %c0_37] : memref<32x192xbf16, #tpu.memory_space<vmem>>, vector<32x192xbf16>
    %cst_38 = arith.constant dense<0.000000e+00> : vector<16x192xf32>
    %110 = tpu.matmul %108, %109, %cst_38 {dimension_numbers = #tpu.dot_dimension_numbers<[1], [0], [0], [1], [0, 0, 1, 1], [], []>} : vector<16x32xbf16>, vector<32x192xbf16>, vector<16x192xf32> -> vector<16x192xf32>
    %111 = vector.extract_strided_slice %110 {offsets = [0, 0], sizes = [16, 96], strides = [1, 1]} : vector<16x192xf32> to vector<16x96xf32>
    %112 = vector.extract_strided_slice %110 {offsets = [0, 96], sizes = [16, 96], strides = [1, 1]} : vector<16x192xf32> to vector<16x96xf32>
    %113 = arith.negf %111 : vector<16x96xf32>
    %114 = math.exp %113 : vector<16x96xf32>
    %cst_39 = arith.constant 1.000000e+00 : f32
    %115 = vector.broadcast %cst_39 : f32 to vector<16x96xf32>
    %116 = arith.addf %115, %114 : vector<16x96xf32>
    %117 = arith.divf %115, %116 : vector<16x96xf32>
    %118 = arith.mulf %111, %117 : vector<16x96xf32>
    %119 = arith.mulf %118, %112 : vector<16x96xf32>
    %120 = arith.truncf %119 : vector<16x96xf32> to vector<16x96xbf16>
    %c0_40 = arith.constant 0 : index
    %c0_41 = arith.constant 0 : index
    %121 = vector.load %arg5[%c0_40, %c0_41] : memref<96x32xbf16, #tpu.memory_space<vmem>>, vector<96x32xbf16>
    %cst_42 = arith.constant dense<0.000000e+00> : vector<16x32xf32>
    %122 = tpu.matmul %120, %121, %cst_42 {dimension_numbers = #tpu.dot_dimension_numbers<[1], [0], [0], [1], [0, 0, 1, 1], [], []>} : vector<16x96xbf16>, vector<96x32xbf16>, vector<16x32xf32> -> vector<16x32xf32>
    %123 = arith.addf %94, %122 : vector<16x32xf32>
    %c0_43 = arith.constant 0 : index
    %c0_44 = arith.constant 0 : index
    %124 = vector.load %arg11[%c0_43, %c0_44] : memref<16x32xf32, #tpu.memory_space<vmem>>, vector<16x32xf32>
    tpu.vector_store %arg11[%c0_43, %c0_44], %123 {strides = array<i32>} : memref<16x32xf32, #tpu.memory_space<vmem>>, vector<16x32xf32>,
    return
  }
  func.func @transform_0(%arg0: i32) -> (i32, i32) {
    %c0_i32 = arith.constant 0 : i32
    %c0_i32_0 = arith.constant 0 : i32
    %c0_i32_1 = arith.constant 0 : i32
    return %c0_i32, %c0_i32_0 : i32, i32
  }
  func.func @transform_1(%arg0: i32) -> (i32, i32) {
    %c0_i32 = arith.constant 0 : i32
    %c0_i32_0 = arith.constant 0 : i32
    %c0_i32_1 = arith.constant 0 : i32
    return %c0_i32, %c0_i32_0 : i32, i32
  }
  func.func @transform_2(%arg0: i32) -> (i32, i32) {
    %c0_i32 = arith.constant 0 : i32
    %c0_i32_0 = arith.constant 0 : i32
    %c0_i32_1 = arith.constant 0 : i32
    return %c0_i32, %c0_i32_0 : i32, i32
  }
  func.func @transform_3(%arg0: i32) -> (i32, i32) {
    %c0_i32 = arith.constant 0 : i32
    %c0_i32_0 = arith.constant 0 : i32
    %c0_i32_1 = arith.constant 0 : i32
    return %c0_i32, %c0_i32_0 : i32, i32
  }
  func.func @transform_4(%arg0: i32) -> (i32, i32) {
    %c0_i32 = arith.constant 0 : i32
    %c0_i32_0 = arith.constant 0 : i32
    %c0_i32_1 = arith.constant 0 : i32
    return %c0_i32, %c0_i32_0 : i32, i32
  }
  func.func @transform_5(%arg0: i32) -> (i32, i32) {
    %c0_i32 = arith.constant 0 : i32
    %c0_i32_0 = arith.constant 0 : i32
    %c0_i32_1 = arith.constant 0 : i32
    return %c0_i32, %c0_i32_0 : i32, i32
  }
  func.func @transform_6(%arg0: i32) -> (i32, i32) {
    %c0_i32 = arith.constant 0 : i32
    %c0_i32_0 = arith.constant 0 : i32
    %c0_i32_1 = arith.constant 0 : i32
    return %c0_i32, %c0_i32_0 : i32, i32
  }
  func.func @transform_7(%arg0: i32) -> (i32, i32) {
    %c0_i32 = arith.constant 0 : i32
    %c0_i32_0 = arith.constant 0 : i32
    %c0_i32_1 = arith.constant 0 : i32
    return %c0_i32, %c0_i32_0 : i32, i32
  }
  func.func @transform_8(%arg0: i32) -> (i32, i32) {
    %c0_i32 = arith.constant 0 : i32
    %c0_i32_0 = arith.constant 0 : i32
    %c0_i32_1 = arith.constant 0 : i32
    return %c0_i32, %c0_i32_0 : i32, i32
  }
  func.func @transform_9(%arg0: i32) -> (i32, i32) {
    %c0_i32 = arith.constant 0 : i32
    %c0_i32_0 = arith.constant 0 : i32
    %c0_i32_1 = arith.constant 0 : i32
    return %c0_i32, %c0_i32_0 : i32, i32
  }
  func.func @transform_10(%arg0: i32) -> (i32, i32) {
    %c0_i32 = arith.constant 0 : i32
    %c0_i32_0 = arith.constant 0 : i32
    %c0_i32_1 = arith.constant 0 : i32
    return %c0_i32, %c0_i32_0 : i32, i32
  }
}

</mosaic_0001>

<bundles_post_ra>
// kernel: transformer_block.1
= control target key start
LH: loop header
LB: loop body
LE: loop exit
PB: predicated region body
PF: predicated region fallthrough
CT: control target
= control target key end

     0   :  { %15 = vsyncpa [#allocation3], 0  ;;  %s2600_s0 = inlined_call_operand.vmem [shape: f32[16,32], index: 0, kind: input, shape index: {}]   ;;  %s2601_s1 = inlined_call_operand.vmem [shape: bf16[32,96], index: 1, kind: input, shape index: {}]   ;;  %s2602_s2 = inlined_call_operand.hbm [shape: bf16[32,32], index: 2, kind: input, shape index: {}]   ;;  %s2603_s3 = inlined_call_operand.vmem [shape: bf16[32,192], index: 3, kind: input, shape index: {}]   ;;  %s2604_s4 = inlined_call_operand.vmem [shape: bf16[96,32], index: 4, kind: input, shape index: {}]   ;;  %s2605_s5 = inlined_call_operand.hbm [shape: f32[1,32], index: 5, kind: input, shape index: {}]   ;;  %s2606_s6 = inlined_call_operand.hbm [shape: f32[1,32], index: 6, kind: input, shape index: {}]   ;;  %s2607_s7 = inlined_call_operand.hbm [shape: f32[16,32], index: 7, kind: input, shape index: {}]   ;;  %s2608_s8 = inlined_call_operand.vmem [shape: f32[16,32], index: 8, kind: input, shape index: {}]   ;;  %s2609_s9 = inlined_call_operand.hbm [shape: f32[16,16], index: 9, kind: input, shape index: {}]   ;;  %s2610_s10 = inlined_call_operand.hbm [shape: f32[16,32], index: 10, kind: output, shape index: {}]  }
   0x1   :  { %16 = vsyncpa [#allocation6], 0 }
   0x2   :  { %17 = vsyncpa [#allocation9], 0 }
   0x3   :  { %18 = vsyncpa [#allocation4], 0  ;;  %s2243_s13 = smov [#allocation5]   ;;  %s2244_s15 = smov [#allocation8]  }
   0x4   :  { %s45_s14 = sshll.u32 %s2243_s13, 4  ;;  %s64_s16 = sshll.u32 %s2244_s15, 4  ;;  %s46_s14 = int_to_ptr.vmem [resolvable:$true] %s45_s14  ;;  %s65_s16 = int_to_ptr.vmem [resolvable:$true] %s64_s16 }
   0x5   :  { %s2123_s17 = scalar_lea.vmem %s46_s14, 16  ;;  %s2127_s18 = scalar_lea.vmem %s46_s14, 32 }
   0x6   :  { %p2124_p0 = scmp.ne.s32.totalorder %s46_s14, %s2123_s17  ;;  %p2128_p1 = scmp.lt.s32.totalorder %s46_s14, %s46_s14 }
   0x7   :  { %p2129_p2 = scmp.lt.s32.totalorder %s2127_s18, %s2123_s17 }
   0x9   :  { %p2130_p3 = por %p2129_p2, %p2128_p1 }
   0xb   :  { %p2131_p4 = pnand %p2130_p3, %p2124_p0 }
   0xd   :  { %2134 = shalt.err (!%p2131_p4)
}
   0xe   :  { %48 = dma.hbm_to_vmem [thread:$0]  %s2605_s5, 16, %s46_s14, [#allocation6]  }
   0xf   :  { %s2143_s21 = scalar_lea.vmem %s65_s16, 256  ;;  %p2148_p6 = scmp.lt.s32.totalorder %s65_s16, %s65_s16 }
  0x10   :  { %p2144_p5 = scmp.ne.s32.totalorder %s65_s16, %s2143_s21  ;;  %p2149_p7 = scmp.lt.s32.totalorder %s2143_s21, %s2143_s21 }
  0x12   :  { %p2150_p8 = por %p2149_p7, %p2148_p6 }
  0x14   :  { %p2151_p9 = pnand %p2150_p8, %p2144_p5 }
  0x16   :  { %2154 = shalt.err (!%p2151_p9)
}
  0x17   :  { %s2245_s22 = smov 128   ;;  %s2246_s23 = smov 8  }
  0x18   :  { %70 = dma.hbm_to_vmem [thread:$0]  %s2607_s7, 256, %s65_s16, [#allocation9], %s2245_s22, %s2245_s22, %s2246_s23  }
  0x19   :  { %s2247_s26 = smov [#allocation2]  }
  0x1a   :  { %s28_s27 = sshll.u32 %s2247_s26, 4  ;;  %s29_s27 = int_to_ptr.vmem [resolvable:$true] %s28_s27 }
  0x1b   :  { %s2163_s5 = scalar_lea.vmem %s29_s27, 256  ;;  %p2168_p11 = scmp.lt.s32.totalorder %s29_s27, %s29_s27 }
  0x1c   :  { %p2164_p10 = scmp.ne.s32.totalorder %s29_s27, %s2163_s5  ;;  %p2169_p12 = scmp.lt.s32.totalorder %s2163_s5, %s2163_s5 }
  0x1e   :  { %p2170_p13 = por %p2169_p12, %p2168_p11 }
  0x20   :  { %p2171_p0 = pnand %p2170_p13, %p2164_p10 }
  0x22   :  { %2174 = shalt.err (!%p2171_p0)
}
  0x23   :  { %s2248_s28 = smov 64   ;;  %s2249_s29 = smov 4  }
  0x24   :  { %34 = dma.hbm_to_vmem [thread:$0]  %s2602_s2, 256, %s29_s27, [#allocation3], %s2248_s28, %s2248_s28, %s2249_s29  }
  0x25   :  { %s2250_s12 = smov [#allocation7]   ;;  %s2251_s13 = smov [#allocation10]  }
  0x26   :  { %s55_s7 = sshll.u32 %s2250_s12, 4  ;;  %s78_s14 = sshll.u32 %s2251_s13, 4  ;;  %s56_s7 = int_to_ptr.vmem [resolvable:$true] %s55_s7  ;;  %s79_s14 = int_to_ptr.vmem [resolvable:$true] %s78_s14 }
  0x27   :  { %s2183_s15 = scalar_lea.vmem %s56_s7, 16  ;;  %s2187_s16 = scalar_lea.vmem %s56_s7, 32 }
  0x28   :  { %p2184_p1 = scmp.ne.s32.totalorder %s56_s7, %s2183_s15  ;;  %p2188_p2 = scmp.lt.s32.totalorder %s56_s7, %s56_s7 }
  0x29   :  { %p2189_p3 = scmp.lt.s32.totalorder %s2187_s16, %s2183_s15 }
  0x2b   :  { %p2190_p4 = por %p2189_p3, %p2188_p2 }
  0x2d   :  { %p2191_p5 = pnand %p2190_p4, %p2184_p1 }
  0x2f   :  { %2194 = shalt.err (!%p2191_p5)
}
  0x30   :  { %58 = dma.hbm_to_vmem [thread:$0]  %s2606_s6, 16, %s56_s7, [#allocation6]  }
  0x31   :  { %s2203_s19 = scalar_lea.vmem %s79_s14, 256  ;;  %p2208_p7 = scmp.lt.s32.totalorder %s79_s14, %s79_s14 }
  0x32   :  { %p2204_p6 = scmp.ne.s32.totalorder %s79_s14, %s2203_s19  ;;  %p2209_p8 = scmp.lt.s32.totalorder %s2203_s19, %s2203_s19 }
  0x34   :  { %p2210_p9 = por %p2209_p8, %p2208_p7 }
  0x36   :  { %p2211_p10 = pnand %p2210_p9, %p2204_p6 }
  0x38   :  { %2214 = shalt.err (!%p2211_p10)
}
  0x39   :  { %84 = dma.hbm_to_vmem [thread:$0]  %s2609_s9, 256, %s79_s14, [#allocation9], %s2245_s22, %s2245_s22, %s2246_s23  }
  0x3a   :  { %2235 = dma.done.wait [#allocation3], 256  }
  0x3b   :  { %2236 = vsyncadd [#allocation3], 4294967040 }
  0x3c   :  { %2237 = dma.done.wait [#allocation6], 32  }
  0x3d   :  { %2238 = vsyncadd [#allocation6], 4294967264 }
  0x3e   :  { %2239 = dma.done.wait [#allocation9], 512  }
  0x3f   :  { %2240 = vsyncadd [#allocation9], 4294966784  ;;  %v2358_v0 = vld [vmem:[%s2600_s0] sm:$0xff]  ;;  %vm106_vm0 = vcmask 261120   ;;  %v2363_v1 = vld [vmem:[%s2600_s0 + $0x8] sm:$0xff]  ;;  %v2252_v7 = vmov 0.0  }
  0x40   :  { %v104_v2 = vmul.f32 %v2358_v0, %v2358_v0  ;;  %v105_v3 = vmul.f32 %v2363_v1, %v2363_v1  ;;  %v2051_v6 = vld [vmem:[%s2601_s1 + $0x8] sm:$0xff]   ;;  %1886 = vmatprep.subr.bf16.mxu1 %v2252_v7  ;;  %vm2253_vm1 = vmmov 0   ;;  %v2052_v8 = vld [vmem:[%s2601_s1] sm:$0xff]   ;;  %v1763_v18 = vld [vmem:[#allocation5] ss:$0 sm:$0xff]  ;;  %s2254_s1 = smov 112  }
  0x41   :  { %1890 = vmatprep.mubr.msk.bf16.mxu1 %vm2253_vm1, %v2252_v7  ;;  %1887 = vmatpush3.bf16.msra.mxu1 %v2051_v6  ;;  %s2255_s5 = smov 16   ;;  %s2256_s29 = smov 80   ;;  %v192_v27 = vld [vmem:[#allocation8 + $0x8] sm:$0xff]  ;;  %v191_v28 = vld [vmem:[#allocation8] sm:$0xff]  ;;  %vm211_vm2 = vcmask 130048   ;;  %v194_v30 = vld [vmem:[%s2608_s8 + $0x8] sm:$0xff] }
  0x42   :  { %v107_v4 = vsel %vm106_vm0, %v104_v2, 0.0  ;;  %v110_v5 = vsel %vm106_vm0, %v105_v3, 0.0  ;;  %1888 = vmatprep.subr.bf16.mxu1 %v2252_v7  ;;  %s2257_s30 = smov 32   ;;  %v193_v40 = vld [vmem:[%s2608_s8] sm:$0xff]  ;;  %vm262_vm3 = vcmask 31744   ;;  %s2258_s8 = smov 124  }
  0x43   :  { %108 = vadd.xlane.f32.xlu0 %v107_v4  ;;  %s2259_s14 = smov 108   ;;  %s2260_s15 = smov 96   ;;  %vm1447_vm4 = vcmask 64512   ;;  %vm1452_vm5 = vcmask 195584   ;;  %vm1695_vm6 = vcmask 785408  }
  0x44   :  { %s2261_s16 = smov 76   ;;  %s2262_s17 = smov 92  }
  0x45   :  { %1889 = vmatpush3.bf16.msra.mxu1 %v2052_v8  ;;  %s2263_s18 = smov 72   ;;  %s2264_s19 = smov 88  }
  0x46   :  { %s2265_s2 = smov 104   ;;  %s2266_s20 = smov 120  }
  0x47   :  { %111 = vadd.xlane.f32.xlu0 %v110_v5  ;;  %s2267_s6 = smov 68   ;;  %s2268_s21 = smov 84  }
  0x48   :  { %s2269_s24 = smov 100   ;;  %s2270_s25 = smov 116  }
  0x49   :  { %s2271_s9 = smov 56   ;;  %s2272_s26 = smov 48  }
  0x4a   :  { %s2274_s0 = smov 24  }
  0xcc   :  { %v109_v9 = vpop.xlane.xlu0 %108 }
  0xcd   :  { %v114_v10 = vmul.f32 0.03125, %v109_v9 }
  0xcf   :  { %v116_v11 = vadd.f32 1e-06, %v114_v10 }
  0xd0   :  { %v112_v12 = vpop.xlane.xlu0 %111 }
  0xd1   :  { %2067 = vrsqrt.f32 %v116_v11  ;;  %v115_v13 = vmul.f32 0.03125, %v112_v12 }
  0xd3   :  { %v117_v14 = vadd.f32 1e-06, %v115_v13 }
  0xd5   :  { %2069 = vrsqrt.f32 %v117_v14 }
  0xde   :  { %v2068_v15 = vpop.eup %2067 }
  0xdf   :  { %v120_v16 = vmul.f32 %v2068_v15, %v2358_v0 }
  0xe1   :  { %v128_v20 = vmul.f32 %v1763_v18, %v120_v16 }
  0xe2   :  { %v2070_v17 = vpop.eup %2069 }
  0xe3   :  { %v121_v19 = vmul.f32 %v2070_v17, %v2363_v1 }
  0xe5   :  { %v129_v21 = vmul.f32 %v1763_v18, %v121_v19 }
  0xe7   :  { %v130_v22 = vpack.c.bf16 %v129_v21, %v128_v20 }
  0xe9   :  { %1891 = vmatmul.mubr.msk.bf16.vlgmr.msra.gmra.mxu1 %vm106_vm0, %v130_v22 }
 0x1a9   :  { %v2384_v23 = vpop.f32.mrf.mxu1 }
 0x1aa   :  { %199 = vrot.lane.b32.xlu0 %v2384_v23, %s2254_s1  ;;  %v195_v50 = vmul.f32 %v191_v28, %v2384_v23 }
 0x1ab   :  { %v1892_v24 = vpop.f32.mrf.mxu1 }
 0x1ad   :  { %v2388_v25 = vpop.f32.mrf.mxu1 }
 0x1ae   :  { %207 = vrot.lane.b32.xlu0 %v2388_v25, %s2255_s5  ;;  %201 = vrot.lane.b32.xlu1 %v2388_v25, %s2254_s1  ;;  %v196_v34 = vmul.f32 %v192_v27, %v2388_v25 }
 0x1af   :  { %v1893_v26 = vpop.f32.mrf.mxu1 }
 0x1b2   :  { %230 = vrot.lane.b32.xlu1 %v2388_v25, %s2256_s29 }
 0x1b6   :  { %228 = vrot.lane.b32.xlu1 %v2384_v23, %s2256_s29 }
 0x1ba   :  { %222 = vrot.lane.b32.xlu1 %v192_v27, %s2257_s30 }
 0x1be   :  { %220 = vrot.lane.b32.xlu1 %v191_v28, %s2257_s30 }
 0x21c   :  { %v200_v29 = vpop.permute.xlu0 %199 }
 0x220   :  { %v208_v31 = vpop.permute.xlu0 %207  ;;  %v202_v32 = vpop.permute.xlu1 %201 }
 0x221   :  { %v213_v33 = vsel %vm211_vm2, %v202_v32, %v208_v31 }
 0x222   :  { %v215_v35 = vmul.f32 %v213_v33, %v194_v30 }
 0x224   :  { %v2405_v36 = vadd.f32 %v215_v35, %v196_v34  ;;  %v231_v37 = vpop.permute.xlu1 %230  ;;  %v248_v34 = vld [vmem:[#allocation10] sm:$0xff] }
 0x225   :  { %v235_v38 = vsel %vm211_vm2, %v231_v37, %v202_v32 }
 0x226   :  { %v237_v39 = vmul.f32 %v235_v38, %v194_v30  ;;  %v249_v30 = vld [vmem:[#allocation10 + $0x8] sm:$0xff] }
 0x228   :  { %242 = vrot.lane.b32.xlu1 %v237_v39, %s2257_s30  ;;  %v229_v41 = vpop.permute.xlu1 %228 }
 0x229   :  { %v234_v42 = vsel %vm211_vm2, %v229_v41, %v200_v29 }
 0x22a   :  { %v236_v43 = vmul.f32 %v234_v42, %v193_v40 }
 0x22c   :  { %240 = vrot.lane.b32.xlu1 %v236_v43, %s2257_s30  ;;  %v223_v44 = vpop.permute.xlu1 %222 }
 0x22d   :  { %v227_v55 = vmul.f32 %v223_v44, %v2388_v25 }
 0x230   :  { %205 = vrot.lane.b32.xlu1 %v2384_v23, %s2255_s5  ;;  %v221_v45 = vpop.permute.xlu1 %220 }
 0x231   :  { %v226_v53 = vmul.f32 %v221_v45, %v2384_v23 }
 0x29a   :  { %v243_v46 = vpop.permute.xlu1 %242 }
 0x29b   :  { %v247_v56 = vadd.f32 %v243_v46, %v227_v55 }
 0x29e   :  { %v241_v47 = vpop.permute.xlu1 %240 }
 0x29f   :  { %v246_v54 = vadd.f32 %v241_v47, %v226_v53 }
 0x2a2   :  { %v206_v48 = vpop.permute.xlu1 %205 }
 0x2a3   :  { %v212_v49 = vsel %vm211_vm2, %v200_v29, %v206_v48 }
 0x2a4   :  { %v214_v51 = vmul.f32 %v212_v49, %v193_v40 }
 0x2a6   :  { %v216_v52 = vadd.f32 %v214_v51, %v195_v50 }
 0x2a8   :  { %526 = vrot.lane.b32.xlu0 %v216_v52, %s2258_s8  ;;  %252 = vrot.lane.b32.xlu1 %v216_v52, %s2254_s1 }
 0x2a9   :  { %1905 = vmatprep.mubr.msk.f32.mxu0 %vm262_vm3, %v216_v52 }
 0x2ac   :  { %435 = vrot.lane.b32.xlu1 %v216_v52, %s2259_s14  ;;  %254 = vrot.lane.b32.xlu0 %v2405_v36, %s2254_s1 }
 0x2b0   :  { %437 = vrot.lane.b32.xlu1 %v2405_v36, %s2259_s14  ;;  %528 = vrot.lane.b32.xlu0 %v2405_v36, %s2258_s8 }
 0x2b4   :  { %258 = vrot.lane.b32.xlu1 %v246_v54, %s2256_s29  ;;  %346 = vrot.lane.b32.xlu0 %v246_v54, %s2260_s15 }
 0x2b8   :  { %439 = vrot.lane.b32.xlu1 %v246_v54, %s2261_s16  ;;  %530 = vrot.lane.b32.xlu0 %v246_v54, %s2262_s17 }
 0x2bc   :  { %623 = vrot.lane.b32.xlu1 %v246_v54, %s2263_s18  ;;  %714 = vrot.lane.b32.xlu0 %v246_v54, %s2264_s19 }
 0x2c0   :  { %260 = vrot.lane.b32.xlu1 %v247_v56, %s2256_s29  ;;  %348 = vrot.lane.b32.xlu0 %v247_v56, %s2260_s15 }
 0x2c4   :  { %619 = vrot.lane.b32.xlu1 %v216_v52, %s2265_s2  ;;  %710 = vrot.lane.b32.xlu0 %v216_v52, %s2266_s20 }
 0x2c8   :  { %532 = vrot.lane.b32.xlu1 %v247_v56, %s2262_s17  ;;  %441 = vrot.lane.b32.xlu0 %v247_v56, %s2261_s16 }
 0x2cc   :  { %621 = vrot.lane.b32.xlu1 %v2405_v36, %s2265_s2  ;;  %712 = vrot.lane.b32.xlu0 %v2405_v36, %s2266_s20 }
 0x2d0   :  { %625 = vrot.lane.b32.xlu1 %v247_v56, %s2263_s18  ;;  %716 = vrot.lane.b32.xlu0 %v247_v56, %s2264_s19 }
 0x2d4   :  { %807 = vrot.lane.b32.xlu1 %v246_v54, %s2267_s6  ;;  %898 = vrot.lane.b32.xlu0 %v246_v54, %s2268_s21 }
 0x2d8   :  { %809 = vrot.lane.b32.xlu1 %v247_v56, %s2267_s6  ;;  %900 = vrot.lane.b32.xlu0 %v247_v56, %s2268_s21 }
 0x2dc   :  { %803 = vrot.lane.b32.xlu1 %v216_v52, %s2269_s24  ;;  %894 = vrot.lane.b32.xlu0 %v216_v52, %s2270_s25 }
 0x2e0   :  { %805 = vrot.lane.b32.xlu1 %v2405_v36, %s2269_s24  ;;  %896 = vrot.lane.b32.xlu0 %v2405_v36, %s2270_s25 }
 0x31a   :  { %v527_v57 = vpop.permute.xlu0 %526  ;;  %v253_v58 = vpop.permute.xlu1 %252 }
 0x31b   :  { %1898 = vmatprep.mubr.msk.f32.mxu1 %vm262_vm3, %v253_v58 }
 0x31e   :  { %v436_v59 = vpop.permute.xlu1 %435  ;;  %v255_v60 = vpop.permute.xlu0 %254 }
 0x322   :  { %v438_v61 = vpop.permute.xlu1 %437  ;;  %v529_v62 = vpop.permute.xlu0 %528 }
 0x326   :  { %v259_v63 = vpop.permute.xlu1 %258  ;;  %v347_v2 = vpop.permute.xlu0 %346 }
 0x32a   :  { %v440_v3 = vpop.permute.xlu1 %439  ;;  %v531_v4 = vpop.permute.xlu0 %530 }
 0x32e   :  { %v624_v5 = vpop.permute.xlu1 %623  ;;  %v715_v6 = vpop.permute.xlu0 %714 }
 0x332   :  { %v261_v8 = vpop.permute.xlu1 %260  ;;  %v349_v9 = vpop.permute.xlu0 %348 }
 0x333   :  { %1894 = vmatprep.subr.msk.mxu1 %vm262_vm3, %v261_v8  ;;  %1901 = vmatprep.subr.msk.mxu0 %vm262_vm3, %v349_v9 }
 0x334   :  { %1895 = vmatpush3.xpose.msk.msra.mxu1 %vm262_vm3, %v261_v8  ;;  %1902 = vmatpush3.xpose.msk.msra.mxu0 %vm262_vm3, %v349_v9 }
 0x335   :  { %1896 = vmatprep.subr.msk.mxu1 %vm262_vm3, %v259_v63  ;;  %1903 = vmatprep.subr.msk.mxu0 %vm262_vm3, %v347_v2 }
 0x336   :  { %v620_v10 = vpop.permute.xlu1 %619  ;;  %v711_v11 = vpop.permute.xlu0 %710 }
 0x338   :  { %1897 = vmatpush3.xpose.msk.msra.mxu1 %vm262_vm3, %v259_v63  ;;  %1904 = vmatpush3.xpose.msk.msra.mxu0 %vm262_vm3, %v347_v2 }
 0x33a   :  { %v533_v12 = vpop.permute.xlu1 %532  ;;  %v442_v13 = vpop.permute.xlu0 %441 }
 0x33b   :  { %1899 = vmatmul.mubr.msk.f32.vlgmr.msra.gmra.mxu1 %vm262_vm3, %v255_v60  ;;  %1906 = vmatmul.mubr.msk.f32.vlgmr.msra.gmra.mxu0 %vm262_vm3, %v2405_v36 }
 0x33c   :  { %1908 = vmatprep.subr.msk.mxu1 %vm262_vm3, %v442_v13  ;;  %1915 = vmatprep.subr.msk.mxu0 %vm262_vm3, %v533_v12 }
 0x33d   :  { %1909 = vmatpush3.xpose.msk.msra.mxu1 %vm262_vm3, %v442_v13  ;;  %1912 = vmatprep.mubr.msk.f32.mxu1 %vm262_vm3, %v436_v59 }
 0x33e   :  { %1916 = vmatpush3.xpose.msk.msra.mxu0 %vm262_vm3, %v533_v12  ;;  %1919 = vmatprep.mubr.msk.f32.mxu0 %vm262_vm3, %v527_v57  ;;  %v622_v14 = vpop.permute.xlu1 %621  ;;  %v713_v15 = vpop.permute.xlu0 %712 }
 0x33f   :  { %1910 = vmatprep.subr.msk.mxu1 %vm262_vm3, %v440_v3  ;;  %1917 = vmatprep.subr.msk.mxu0 %vm262_vm3, %v531_v4 }
 0x341   :  { %1911 = vmatpush3.xpose.msk.msra.mxu1 %vm262_vm3, %v440_v3 }
 0x342   :  { %1918 = vmatpush3.xpose.msk.msra.mxu0 %vm262_vm3, %v531_v4  ;;  %v626_v16 = vpop.permute.xlu1 %625  ;;  %v717_v17 = vpop.permute.xlu0 %716 }
 0x343   :  { %1922 = vmatprep.subr.msk.mxu1 %vm262_vm3, %v626_v16  ;;  %1929 = vmatprep.subr.msk.mxu0 %vm262_vm3, %v717_v17 }
 0x344   :  { %1913 = vmatmul.mubr.msk.f32.vlgmr.msra.gmra.mxu1 %vm262_vm3, %v438_v61 }
 0x345   :  { %1920 = vmatmul.mubr.msk.f32.vlgmr.msra.gmra.mxu0 %vm262_vm3, %v529_v62  ;;  %1923 = vmatpush3.xpose.msk.msra.mxu1 %vm262_vm3, %v626_v16 }
 0x346   :  { %1926 = vmatprep.mubr.msk.f32.mxu1 %vm262_vm3, %v620_v10  ;;  %1930 = vmatpush3.xpose.msk.msra.mxu0 %vm262_vm3, %v717_v17  ;;  %v808_v18 = vpop.permute.xlu1 %807  ;;  %v899_v19 = vpop.permute.xlu0 %898 }
 0x347   :  { %1933 = vmatprep.mubr.msk.f32.mxu0 %vm262_vm3, %v711_v11  ;;  %1924 = vmatprep.subr.msk.mxu1 %vm262_vm3, %v624_v5 }
 0x348   :  { %1931 = vmatprep.subr.msk.mxu0 %vm262_vm3, %v715_v6 }
 0x349   :  { %1925 = vmatpush3.xpose.msk.msra.mxu1 %vm262_vm3, %v624_v5 }
 0x34a   :  { %1932 = vmatpush3.xpose.msk.msra.mxu0 %vm262_vm3, %v715_v6  ;;  %v810_v20 = vpop.permute.xlu1 %809  ;;  %v901_v21 = vpop.permute.xlu0 %900 }
 0x34b   :  { %1936 = vmatprep.subr.msk.mxu1 %vm262_vm3, %v810_v20  ;;  %1943 = vmatprep.subr.msk.mxu0 %vm262_vm3, %v901_v21 }
 0x34c   :  { %1927 = vmatmul.mubr.msk.f32.vlgmr.msra.gmra.mxu1 %vm262_vm3, %v622_v14 }
 0x34d   :  { %1934 = vmatmul.mubr.msk.f32.vlgmr.msra.gmra.mxu0 %vm262_vm3, %v713_v15  ;;  %1937 = vmatpush3.xpose.msk.msra.mxu1 %vm262_vm3, %v810_v20 }
 0x34e   :  { %1944 = vmatpush3.xpose.msk.msra.mxu0 %vm262_vm3, %v901_v21  ;;  %1938 = vmatprep.subr.msk.mxu1 %vm262_vm3, %v808_v18  ;;  %v804_v22 = vpop.permute.xlu1 %803  ;;  %v895_v24 = vpop.permute.xlu0 %894 }
 0x34f   :  { %1945 = vmatprep.subr.msk.mxu0 %vm262_vm3, %v899_v19  ;;  %1940 = vmatprep.mubr.msk.f32.mxu1 %vm262_vm3, %v804_v22 }
 0x350   :  { %1947 = vmatprep.mubr.msk.f32.mxu0 %vm262_vm3, %v895_v24 }
 0x351   :  { %1939 = vmatpush3.xpose.msk.msra.mxu1 %vm262_vm3, %v808_v18 }
 0x352   :  { %1946 = vmatpush3.xpose.msk.msra.mxu0 %vm262_vm3, %v899_v19  ;;  %v806_v26 = vpop.permute.xlu1 %805  ;;  %v897_v27 = vpop.permute.xlu0 %896 }
 0x353   :  { %1978 = vmatprep.subr.bf16.mxu0 %v2252_v7 }
 0x354   :  { %1941 = vmatmul.mubr.msk.f32.vlgmr.msra.gmra.mxu1 %vm262_vm3, %v806_v26 }
 0x355   :  { %1948 = vmatmul.mubr.msk.f32.vlgmr.msra.gmra.mxu0 %vm262_vm3, %v897_v27 }
 0x356   :  { %1982 = vmatprep.mubr.msk.bf16.mxu0 %vm2253_vm1, %v2252_v7 }
 0x3fb   :  { %v1900_v28 = vpop.f32.mrf.mxu1  ;;  %v1907_v29 = vpop.f32.mrf.mxu0 }
 0x3fc   :  { %v430_v31 = vadd.f32 %v1907_v29, %v1900_v28 }
 0x3fd   :  { %v337_v32 = vpop.f32.mrf.mxu1  ;;  %v424_v33 = vpop.f32.mrf.mxu0 }
 0x3fe   :  { %v425_v35 = vadd.f32 %v424_v33, %v337_v32  ;;  %v434_v36 = vadd.f32 %v430_v31, %v249_v30 }
 0x400   :  { %v990_v37 = vsel %vm211_vm2, %v434_v36, -inf  ;;  %v433_v38 = vadd.f32 %v425_v35, %v248_v34 }
 0x401   :  { %991 = vmax.xlane.f32.xlu0 %v990_v37 }
 0x402   :  { %v987_v39 = vsel %vm211_vm2, %v433_v38, -inf }
 0x403   :  { %988 = vmax.xlane.f32.xlu1 %v987_v39 }
 0x404   :  { %v1914_v40 = vpop.f32.mrf.mxu1 }
 0x405   :  { %v1921_v41 = vpop.f32.mrf.mxu0 }
 0x406   :  { %v614_v42 = vadd.f32 %v1921_v41, %v1914_v40  ;;  %v517_v43 = vpop.f32.mrf.mxu1 }
 0x407   :  { %v608_v44 = vpop.f32.mrf.mxu0 }
 0x408   :  { %v609_v45 = vadd.f32 %v608_v44, %v517_v43  ;;  %v618_v46 = vadd.f32 %v614_v42, %v249_v30 }
 0x40a   :  { %v996_v47 = vsel %vm211_vm2, %v618_v46, -inf  ;;  %v617_v48 = vadd.f32 %v609_v45, %v248_v34 }
 0x40b   :  { %997 = vmax.xlane.f32.xlu1 %v996_v47 }
 0x40c   :  { %v1928_v49 = vpop.f32.mrf.mxu1  ;;  %v993_v50 = vsel %vm211_vm2, %v617_v48, -inf }
 0x40d   :  { %v1935_v51 = vpop.f32.mrf.mxu0  ;;  %994 = vmax.xlane.f32.xlu0 %v993_v50 }
 0x40e   :  { %v798_v52 = vadd.f32 %v1935_v51, %v1928_v49  ;;  %v701_v53 = vpop.f32.mrf.mxu1 }
 0x40f   :  { %v792_v54 = vpop.f32.mrf.mxu0 }
 0x410   :  { %v793_v55 = vadd.f32 %v792_v54, %v701_v53  ;;  %v802_v56 = vadd.f32 %v798_v52, %v249_v30 }
 0x412   :  { %v1002_v57 = vsel %vm211_vm2, %v802_v56, -inf  ;;  %v801_v58 = vadd.f32 %v793_v55, %v248_v34 }
 0x413   :  { %1003 = vmax.xlane.f32.xlu1 %v1002_v57 }
 0x414   :  { %v1942_v59 = vpop.f32.mrf.mxu1  ;;  %v999_v60 = vsel %vm211_vm2, %v801_v58, -inf }
 0x415   :  { %v1949_v61 = vpop.f32.mrf.mxu0  ;;  %1000 = vmax.xlane.f32.xlu0 %v999_v60 }
 0x416   :  { %v982_v62 = vadd.f32 %v1949_v61, %v1942_v59  ;;  %v885_v63 = vpop.f32.mrf.mxu1 }
 0x417   :  { %v976_v2 = vpop.f32.mrf.mxu0 }
 0x418   :  { %v977_v3 = vadd.f32 %v976_v2, %v885_v63  ;;  %v986_v4 = vadd.f32 %v982_v62, %v249_v30 }
 0x41a   :  { %v1008_v5 = vsel %vm211_vm2, %v986_v4, -inf  ;;  %v985_v6 = vadd.f32 %v977_v3, %v248_v34 }
 0x41b   :  { %1009 = vmax.xlane.f32.xlu1 %v1008_v5 }
 0x41c   :  { %v1005_v8 = vsel %vm211_vm2, %v985_v6, -inf }
 0x41d   :  { %1006 = vmax.xlane.f32.xlu0 %v1005_v8 }
 0x42c   :  { %1075 = vrot.lane.b32.xlu1 %v2384_v23, %s2248_s28 }
 0x430   :  { %1164 = vrot.lane.b32.xlu1 %v2388_v25, %s2271_s9 }
 0x433   :  { %1077 = vrot.lane.b32.xlu0 %v2388_v25, %s2248_s28  ;;  %s2273_s28 = smov 40  }
 0x434   :  { %1251 = vrot.lane.b32.xlu1 %v2388_v25, %s2272_s26 }
 0x437   :  { %1162 = vrot.lane.b32.xlu0 %v2384_v23, %s2271_s9 }
 0x43b   :  { %1249 = vrot.lane.b32.xlu0 %v2384_v23, %s2272_s26 }
 0x48a   :  { %v992_v9 = vpop.xlane.xlu0 %991 }
 0x48b   :  { %v1012_v10 = vsub.f32 %v434_v36, %v992_v9 }
 0x48c   :  { %v989_v11 = vpop.xlane.xlu1 %988 }
 0x48d   :  { %v1021_v12 = vmul.f32 1.442695, %v1012_v10  ;;  %v1011_v13 = vsub.f32 %v433_v38, %v989_v11 }
 0x48f   :  { %2071 = vpow2.f32 %v1021_v12  ;;  %v1019_v14 = vmul.f32 1.442695, %v1011_v13 }
 0x491   :  { %2073 = vpow2.f32 %v1019_v14 }
 0x494   :  { %v998_v15 = vpop.xlane.xlu1 %997 }
 0x495   :  { %v1014_v16 = vsub.f32 %v618_v46, %v998_v15 }
 0x496   :  { %v995_v17 = vpop.xlane.xlu0 %994 }
 0x497   :  { %v1025_v18 = vmul.f32 1.442695, %v1014_v16  ;;  %v1013_v19 = vsub.f32 %v617_v48, %v995_v17 }
 0x499   :  { %2075 = vpow2.f32 %v1025_v18  ;;  %v1023_v20 = vmul.f32 1.442695, %v1013_v19 }
 0x49b   :  { %2077 = vpow2.f32 %v1023_v20 }
 0x49c   :  { %v2499_v21 = vpop.eup %2071  ;;  %v1004_v22 = vpop.xlane.xlu1 %1003 }
 0x49d   :  { %v1016_v24 = vsub.f32 %v802_v56, %v1004_v22  ;;  %v1038_v26 = vsel %vm211_vm2, %v2499_v21, 0.0 }
 0x49e   :  { %v2074_v27 = vpop.eup %2073  ;;  %v1001_v28 = vpop.xlane.xlu0 %1000  ;;  %1039 = vadd.xlane.f32.xlu1 %v1038_v26  ;;  %v2053_v26 = vld [vmem:[#allocation2 + $0x8] sm:$0xff]  }
 0x49f   :  { %v1029_v29 = vmul.f32 1.442695, %v1016_v24  ;;  %v1015_v30 = vsub.f32 %v801_v58, %v1001_v28  ;;  %v1035_v31 = vsel %vm211_vm2, %v2074_v27, 0.0  ;;  %1979 = vmatpush3.bf16.msra.mxu0 %v2053_v26 }
 0x4a0   :  { %1036 = vadd.xlane.f32.xlu0 %v1035_v31  ;;  %1980 = vmatprep.subr.bf16.mxu0 %v2252_v7 }
 0x4a1   :  { %2079 = vpow2.f32 %v1029_v29  ;;  %v1027_v32 = vmul.f32 1.442695, %v1015_v30  ;;  %v2054_v29 = vld [vmem:[#allocation2] sm:$0xff]  }
 0x4a3   :  { %2081 = vpow2.f32 %v1027_v32  ;;  %1981 = vmatpush3.bf16.msra.mxu0 %v2054_v29 }
 0x4a4   :  { %v1010_v33 = vpop.xlane.xlu1 %1009  ;;  %1986 = vmatprep.subr.bf16.mxu0 %v2252_v7 }
 0x4a5   :  { %v1018_v34 = vsub.f32 %v986_v4, %v1010_v33 }
 0x4a6   :  { %v2504_v35 = vpop.eup %2075  ;;  %v1007_v36 = vpop.xlane.xlu0 %1006 }
 0x4a7   :  { %v1033_v37 = vmul.f32 1.442695, %v1018_v34  ;;  %v1017_v38 = vsub.f32 %v985_v6, %v1007_v36  ;;  %v1044_v39 = vsel %vm211_vm2, %v2504_v35, 0.0 }
 0x4a8   :  { %v2078_v40 = vpop.eup %2077  ;;  %1045 = vadd.xlane.f32.xlu1 %v1044_v39  ;;  %v1076_v41 = vpop.permute.xlu1 %1075 }
 0x4a9   :  { %2083 = vpow2.f32 %v1033_v37  ;;  %v1031_v42 = vmul.f32 1.442695, %v1017_v38  ;;  %v1041_v43 = vsel %vm211_vm2, %v2078_v40, 0.0 }
 0x4aa   :  { %v1078_v44 = vpop.permute.xlu0 %1077  ;;  %1042 = vadd.xlane.f32.xlu0 %v1041_v43 }
 0x4ab   :  { %2085 = vpow2.f32 %v1031_v42  ;;  %1950 = vmatprep.subr.mxu1 %v1078_v44 }
 0x4ac   :  { %1951 = vmatpush3.msra.mxu1 %v1078_v44  ;;  %v1165_v46 = vpop.permute.xlu1 %1164 }
 0x4ad   :  { %1952 = vmatprep.subr.mxu1 %v1076_v41 }
 0x4ae   :  { %v2080_v45 = vpop.eup %2079  ;;  %1953 = vmatpush3.msra.mxu1 %v1076_v41  ;;  %v1163_v54 = vpop.permute.xlu0 %1162 }
 0x4af   :  { %1957 = vmatprep.subr.mxu1 %v1165_v46  ;;  %v1050_v47 = vsel %vm211_vm2, %v2080_v45, 0.0 }
 0x4b0   :  { %v2082_v48 = vpop.eup %2081  ;;  %1051 = vadd.xlane.f32.xlu1 %v1050_v47  ;;  %v1252_v55 = vpop.permute.xlu1 %1251 }
 0x4b1   :  { %v1047_v49 = vsel %vm211_vm2, %v2082_v48, 0.0 }
 0x4b2   :  { %1048 = vadd.xlane.f32.xlu0 %v1047_v49  ;;  %v1250_v56 = vpop.permute.xlu0 %1249 }
 0x4b6   :  { %v2084_v50 = vpop.eup %2083 }
 0x4b7   :  { %v1056_v51 = vsel %vm211_vm2, %v2084_v50, 0.0 }
 0x4b8   :  { %v2086_v52 = vpop.eup %2085  ;;  %1057 = vadd.xlane.f32.xlu1 %v1056_v51 }
 0x4b9   :  { %v1053_v53 = vsel %vm211_vm2, %v2086_v52, 0.0 }
 0x4ba   :  { %1054 = vadd.xlane.f32.xlu0 %v1053_v53 }
 0x4c9   :  { %1338 = vrot.lane.b32.xlu1 %v2388_v25, %s2273_s28 }
 0x4d0   :  { %1336 = vrot.lane.b32.xlu0 %v2384_v23, %s2273_s28 }
 0x527   :  { %v1040_v57 = vpop.xlane.xlu1 %1039 }
 0x528   :  { %2087 = vrcp.f32 %v1040_v57 }
 0x529   :  { %v1037_v58 = vpop.xlane.xlu0 %1036 }
 0x52a   :  { %2089 = vrcp.f32 %v1037_v58 }
 0x531   :  { %v1046_v59 = vpop.xlane.xlu1 %1045 }
 0x532   :  { %2091 = vrcp.f32 %v1046_v59 }
 0x533   :  { %v1043_v60 = vpop.xlane.xlu0 %1042 }
 0x534   :  { %2093 = vrcp.f32 %v1043_v60 }
 0x535   :  { %v2088_v61 = vpop.eup %2087 }
 0x536   :  { %v1068_v3 = vmul.f32 %v2088_v61, %v2499_v21  ;;  %v2055_v61 = vld [vmem:[%s2603_s3 + $0x10] ss:$8 sps:$4 sm:$0xff]  }
 0x537   :  { %v2090_v62 = vpop.eup %2089 }
 0x538   :  { %v1067_v63 = vmul.f32 %v2090_v62, %v2074_v27  ;;  %v2060_v62 = vld [vmem:[%s2603_s3 + $0x4] ss:$8 sps:$4 sm:$0xff]  }
 0x539   :  { %v1052_v2 = vpop.xlane.xlu1 %1051 }
 0x53a   :  { %1954 = vmatprep.mubr.msk.f32.mxu1 %vm211_vm2, %v1067_v63  ;;  %2095 = vrcp.f32 %v1052_v2  ;;  %v2275_v63 = vmov 0  }
 0x53b   :  { %v1049_v23 = vpop.xlane.xlu0 %1048  ;;  %1955 = vmatmul.mubr.msk.f32.vlgmr.msra.gmra.mxu1 %vm211_vm2, %v1068_v3 }
 0x53c   :  { %2097 = vrcp.f32 %v1049_v23  ;;  %1958 = vmatpush3.msra.mxu1 %v1165_v46 }
 0x53d   :  { %1959 = vmatprep.subr.mxu1 %v1163_v54 }
 0x53e   :  { %1960 = vmatpush3.msra.mxu1 %v1163_v54 }
 0x53f   :  { %1964 = vmatprep.subr.mxu1 %v1252_v55  ;;  %v2092_v25 = vpop.eup %2091 }
 0x540   :  { %v1070_v9 = vmul.f32 %v2092_v25, %v2504_v35 }
 0x541   :  { %v2094_v4 = vpop.eup %2093  ;;  %v1058_v5 = vpop.xlane.xlu1 %1057 }
 0x542   :  { %v1069_v6 = vmul.f32 %v2094_v4, %v2078_v40  ;;  %2099 = vrcp.f32 %v1058_v5 }
 0x543   :  { %v1055_v8 = vpop.xlane.xlu0 %1054 }
 0x544   :  { %2101 = vrcp.f32 %v1055_v8  ;;  %1961 = vmatprep.mubr.msk.f32.mxu1 %vm211_vm2, %v1069_v6 }
 0x545   :  { %1962 = vmatmul.mubr.msk.f32.vlgmr.msra.gmra.mxu1 %vm211_vm2, %v1070_v9  ;;  %v1339_v11 = vpop.permute.xlu1 %1338 }
 0x546   :  { %1965 = vmatpush3.msra.mxu1 %v1252_v55 }
 0x547   :  { %1966 = vmatprep.subr.mxu1 %v1250_v56  ;;  %v2096_v10 = vpop.eup %2095  ;;  %v1337_v15 = vpop.permute.xlu0 %1336 }
 0x548   :  { %1967 = vmatpush3.msra.mxu1 %v1250_v56  ;;  %v1072_v14 = vmul.f32 %v2096_v10, %v2080_v45  ;;  %v1810_v10 = vld [vmem:[#allocation7] ss:$0 sm:$0xff] }
 0x549   :  { %v2098_v12 = vpop.eup %2097  ;;  %1971 = vmatprep.subr.mxu1 %v1339_v11 }
 0x54a   :  { %v1071_v13 = vmul.f32 %v2098_v12, %v2082_v48 }
 0x54c   :  { %1968 = vmatprep.mubr.msk.f32.mxu1 %vm211_vm2, %v1071_v13 }
 0x54d   :  { %1969 = vmatmul.mubr.msk.f32.vlgmr.msra.gmra.mxu1 %vm211_vm2, %v1072_v14 }
 0x54e   :  { %1972 = vmatpush3.msra.mxu1 %v1339_v11 }
 0x54f   :  { %1973 = vmatprep.subr.mxu1 %v1337_v15  ;;  %v2100_v16 = vpop.eup %2099 }
 0x550   :  { %1974 = vmatpush3.msra.mxu1 %v1337_v15  ;;  %v1074_v19 = vmul.f32 %v2100_v16, %v2084_v50  ;;  %v2061_v15 = vld [vmem:[%s2604_s4 + $0x28] sm:$0xff]   ;;  %v2062_v16 = vld [vmem:[%s2604_s4 + $0x20] sm:$0xff]  }
 0x551   :  { %v2102_v17 = vpop.eup %2101 }
 0x552   :  { %v1073_v18 = vmul.f32 %v2102_v17, %v2086_v52  ;;  %v2063_v17 = vld [vmem:[%s2604_s4 + $0x18] sm:$0xff]  }
 0x554   :  { %1975 = vmatprep.mubr.msk.f32.mxu1 %vm211_vm2, %v1073_v18  ;;  %v2064_v18 = vld [vmem:[%s2604_s4 + $0x10] sm:$0xff]  }
 0x555   :  { %1976 = vmatmul.mubr.msk.f32.vlgmr.msra.gmra.mxu1 %vm211_vm2, %v1074_v19  ;;  %v2065_v19 = vld [vmem:[%s2604_s4 + $0x8] sm:$0xff]  }
 0x556   :  { %1603 = vmatprep.mubr.bf16.mxu1 %v2275_v63 }
 0x5fb   :  { %v1956_v20 = vpop.f32.mrf.mxu1 }
 0x5fd   :  { %v1153_v21 = vpop.f32.mrf.mxu1 }
 0x605   :  { %v1963_v22 = vpop.f32.mrf.mxu1 }
 0x607   :  { %v1240_v24 = vpop.f32.mrf.mxu1 }
 0x608   :  { %v2036_v27 = vpack.i.bf16 %v1963_v22, %v1240_v24 }
 0x60a   :  { %2037 = vrot.lane.b32.xlu1 %v2036_v27, %s2246_s23 }
 0x60d   :  { %v1970_v28 = vpop.f32.mrf.mxu1 }
 0x60f   :  { %v1327_v30 = vpop.f32.mrf.mxu1 }
 0x610   :  { %v2041_v31 = vpack.i.bf16 %v1970_v28, %v1327_v30 }
 0x612   :  { %2042 = vrot.lane.b32.xlu0 %v2041_v31, %s2255_s5 }
 0x615   :  { %v1977_v32 = vpop.f32.mrf.mxu1 }
 0x617   :  { %v1414_v33 = vpop.f32.mrf.mxu1 }
 0x618   :  { %v2046_v34 = vpack.i.bf16 %v1977_v32, %v1414_v33 }
 0x61a   :  { %2047 = vrot.lane.b32.xlu1 %v2046_v34, %s2274_s0 }
 0x67c   :  { %v2038_v35 = vpop.permute.xlu1 %2037 }
 0x67d   :  { %v2040_v37 = vunpack.i.h.bf16 %v2038_v35  ;;  %v2039_v38 = vunpack.i.l.bf16 %v2038_v35 }
 0x67f   :  { %v1449_v42 = vsel %vm1447_vm4, %v1956_v20, %v2040_v37  ;;  %v1448_v43 = vsel %vm1447_vm4, %v1153_v21, %v2039_v38  ;;  %v2066_v20 = vld [vmem:[%s2604_s4] sm:$0xff]   ;;  %s2276_s4 = smov [#allocation11]  }
 0x684   :  { %v2043_v36 = vpop.permute.xlu0 %2042 }
 0x685   :  { %v2045_v39 = vunpack.i.h.bf16 %v2043_v36  ;;  %v2044_v40 = vunpack.i.l.bf16 %v2043_v36 }
 0x687   :  { %v1450_v46 = vsel %vm211_vm2, %v1448_v43, %v2044_v40  ;;  %v1451_v47 = vsel %vm211_vm2, %v1449_v42, %v2045_v39 }
 0x68c   :  { %v2048_v41 = vpop.permute.xlu1 %2047 }
 0x68d   :  { %v2050_v44 = vunpack.i.h.bf16 %v2048_v41  ;;  %v2049_v45 = vunpack.i.l.bf16 %v2048_v41 }
 0x68f   :  { %v1453_v48 = vsel %vm1452_vm5, %v1450_v46, %v2049_v45  ;;  %v1454_v49 = vsel %vm1452_vm5, %v1451_v47, %v2050_v44 }
 0x690   :  { %v1455_v50 = vpack.c.bf16 %v1454_v49, %v1453_v48 }
 0x692   :  { %1983 = vmatmul.mubr.msk.bf16.vlgmr.msra.gmra.mxu0 %vm106_vm0, %v1455_v50 }
 0x693   :  { %1998 = vmatprep.mubr.msk.bf16.mxu0 %vm2253_vm1, %v2252_v7  ;;  %1987 = vmatpush3.bf16.msra.mxu0 %v2061_v15 }
 0x694   :  { %1988 = vmatprep.subr.bf16.mxu0 %v2252_v7 }
 0x697   :  { %1989 = vmatpush3.bf16.msra.mxu0 %v2062_v16 }
 0x698   :  { %1990 = vmatprep.subr.bf16.mxu0 %v2252_v7 }
 0x69b   :  { %1991 = vmatpush3.bf16.msra.mxu0 %v2063_v17 }
 0x69c   :  { %1992 = vmatprep.subr.bf16.mxu0 %v2252_v7 }
 0x69f   :  { %1993 = vmatpush3.bf16.msra.mxu0 %v2064_v18 }
 0x6a0   :  { %1994 = vmatprep.subr.bf16.mxu0 %v2252_v7 }
 0x6a3   :  { %1995 = vmatpush3.bf16.msra.mxu0 %v2065_v19 }
 0x6a4   :  { %1996 = vmatprep.subr.bf16.mxu0 %v2252_v7 }
 0x6a7   :  { %1997 = vmatpush3.bf16.msra.mxu0 %v2066_v20 }
 0x752   :  { %v1509_v51 = vpop.f32.mrf.mxu0 }
 0x753   :  { %v2535_v52 = vadd.f32 %v1509_v51, %v2358_v0  ;;  %v2057_v0 = vld [vmem:[%s2603_s3 + $0x14] ss:$8 sps:$4 sm:$0xff]  }
 0x754   :  { %v1984_v53 = vpop.f32.mrf.mxu0  ;;  %1583 = vmatprep.subr.bf16.mxu1 %v2057_v0 }
 0x755   :  { %v1519_v54 = vmul.f32 %v2535_v52, %v2535_v52  ;;  %1584 = vmatpush1.bf16.msra.mxu1 %v2055_v61 }
 0x756   :  { %v1512_v55 = vpop.f32.mrf.mxu0  ;;  %1585 = vmatprep.subr.bf16.mxu1 %v2060_v62 }
 0x757   :  { %v2540_v56 = vadd.f32 %v1512_v55, %v2363_v1  ;;  %v1521_v57 = vsel %vm106_vm0, %v1519_v54, 0.0  ;;  %v2058_v1 = vld [vmem:[%s2603_s3] ss:$8 sps:$4 sm:$0xff]  }
 0x758   :  { %1522 = vadd.xlane.f32.xlu0 %v1521_v57  ;;  %v1985_v58 = vpop.f32.mrf.mxu0 }
 0x759   :  { %v1520_v59 = vmul.f32 %v2540_v56, %v2540_v56  ;;  %1586 = vmatpush1.bf16.msra.mxu1 %v2058_v1 }
 0x75b   :  { %v1524_v60 = vsel %vm106_vm0, %v1520_v59, 0.0 }
 0x75c   :  { %1525 = vadd.xlane.f32.xlu1 %v1524_v60 }
 0x7e1   :  { %v1523_v2 = vpop.xlane.xlu0 %1522 }
 0x7e2   :  { %v1527_v3 = vmul.f32 0.03125, %v1523_v2 }
 0x7e4   :  { %v1529_v23 = vadd.f32 1e-06, %v1527_v3 }
 0x7e5   :  { %v1526_v25 = vpop.xlane.xlu1 %1525 }
 0x7e6   :  { %2103 = vrsqrt.f32 %v1529_v23  ;;  %v1528_v4 = vmul.f32 0.03125, %v1526_v25 }
 0x7e8   :  { %v1530_v5 = vadd.f32 1e-06, %v1528_v4 }
 0x7ea   :  { %2105 = vrsqrt.f32 %v1530_v5 }
 0x7f3   :  { %v2104_v6 = vpop.eup %2103 }
 0x7f4   :  { %v1533_v8 = vmul.f32 %v2104_v6, %v2535_v52 }
 0x7f6   :  { %v1541_v12 = vmul.f32 %v1810_v10, %v1533_v8 }
 0x7f7   :  { %v2106_v9 = vpop.eup %2105 }
 0x7f8   :  { %v1534_v11 = vmul.f32 %v2106_v9, %v2540_v56 }
 0x7fa   :  { %v1542_v13 = vmul.f32 %v1810_v10, %v1534_v11 }
 0x7fc   :  { %v1543_v14 = vpack.c.bf16 %v1542_v13, %v1541_v12 }
 0x7fe   :  { %1815 = vmatmul.mubr.msk.bf16.vlgmr.msra.gmra.mxu1 %vm106_vm0, %v1543_v14 }
 0x8be   :  { %v1605_v21 = vpop.f32.mrf.mxu1 }
 0x8bf   :  { %1632 = vrot.lane.b32.xlu0 %v1605_v21, %s2257_s30  ;;  %v1816_v27 = vmul.f32 -1.442695, %v1605_v21 }
 0x8c0   :  { %v1607_v22 = vpop.f32.mrf.mxu1 }
 0x8c1   :  { %1634 = vrot.lane.b32.xlu1 %v1607_v22, %s2257_s30  ;;  %2107 = vpow2.f32 %v1816_v27 }
 0x8c2   :  { %v1609_v24 = vpop.f32.mrf.mxu1 }
 0x8c3   :  { %1636 = vrot.lane.b32.xlu0 %v1609_v24, %s2257_s30  ;;  %v1817_v28 = vmul.f32 -1.442695, %v1609_v24 }
 0x8c4   :  { %v1611_v26 = vpop.f32.mrf.mxu1 }
 0x8c5   :  { %1638 = vrot.lane.b32.xlu1 %v1611_v26, %s2257_s30  ;;  %2109 = vpow2.f32 %v1817_v28  ;;  %s1749_s30 = sshll.u32 %s2276_s4, 4  ;;  %s1750_s30 = int_to_ptr.vmem [resolvable:$true] %s1749_s30 }
 0x8c6   :  { %s2215_s24 = scalar_lea.vmem %s1750_s30, 256  ;;  %p2220_p12 = scmp.lt.s32.totalorder %s1750_s30, %s1750_s30 }
 0x8c7   :  { %p2216_p11 = scmp.ne.s32.totalorder %s1750_s30, %s2215_s24  ;;  %p2221_p13 = scmp.lt.s32.totalorder %s2215_s24, %s2215_s24 }
 0x8c9   :  { %p2222_p0 = por %p2221_p13, %p2220_p12 }
 0x8cb   :  { %p2223_p1 = pnand %p2222_p0, %p2216_p11 }
 0x8ce   :  { %v2108_v7 = vpop.eup %2107 }
 0x8cf   :  { %v1620_v30 = vadd.f32 1.0, %v2108_v7 }
 0x8d1   :  { %2111 = vrcp.f32 %v1620_v30 }
 0x8d2   :  { %v2110_v29 = vpop.eup %2109 }
 0x8d3   :  { %v1621_v31 = vadd.f32 1.0, %v2110_v29 }
 0x8d5   :  { %2113 = vrcp.f32 %v1621_v31 }
 0x8de   :  { %v2112_v33 = vpop.eup %2111 }
 0x8df   :  { %v1626_v37 = vmul.f32 %v2112_v33, %v1605_v21 }
 0x8e2   :  { %v2114_v35 = vpop.eup %2113 }
 0x8e3   :  { %v1627_v38 = vmul.f32 %v2114_v35, %v1609_v24 }
 0x931   :  { %v1633_v32 = vpop.permute.xlu0 %1632 }
 0x933   :  { %v1635_v34 = vpop.permute.xlu1 %1634 }
 0x934   :  { %v1640_v36 = vsel %vm106_vm0, %v1633_v32, %v1635_v34 }
 0x935   :  { %v1637_v39 = vpop.permute.xlu0 %1636  ;;  %v1644_v42 = vmul.f32 %v1640_v36, %v1626_v37 }
 0x937   :  { %v1639_v40 = vpop.permute.xlu1 %1638 }
 0x938   :  { %v1641_v41 = vsel %vm106_vm0, %v1637_v39, %v1639_v40 }
 0x939   :  { %v1645_v43 = vmul.f32 %v1641_v41, %v1627_v38 }
 0x93b   :  { %v1646_v44 = vpack.c.bf16 %v1645_v43, %v1644_v42 }
 0x93d   :  { %1999 = vmatmul.mubr.msk.bf16.vlgmr.msra.gmra.mxu0 %vm1695_vm6, %v1646_v44 }
 0x9fd   :  { %v1733_v45 = vpop.f32.mrf.mxu0 }
 0x9fe   :  { %v1740_v46 = vadd.f32 %v1733_v45, %v2535_v52 }
 0x9ff   :  { %v2000_v47 = vpop.f32.mrf.mxu0 }
 0xa00   :  { %1742 = vst.msk [vmem:[#allocation11] sm:$0xff] %vm106_vm0, %v1740_v46 }
 0xa01   :  { %v1736_v48 = vpop.f32.mrf.mxu0 }
 0xa02   :  { %v1741_v49 = vadd.f32 %v1736_v48, %v2540_v56 }
 0xa03   :  { %v2001_v50 = vpop.f32.mrf.mxu0 }
 0xa04   :  { %1743 = vst.msk [vmem:[#allocation11 + $0x8] sm:$0xff] %vm106_vm0, %v1741_v49 }
 0xa05   :  { %2226 = shalt.err (!%p2223_p1)
}
 0xa06   :  { %1755 = dma.vmem_to_hbm [thread:$0]  %s1750_s30, 256, %s2610_s10, [#allocation4], %s2245_s22, %s2245_s22, %s2246_s23  }
 0xa07   :  { %2241 = dma.done.wait [#allocation4], 256  }
 0xa08   :  { %2242 = vsyncadd [#allocation4], 4294967040 }
 0xa09   :  { %1759 = vsyncpa [#allocation3], 1 }
 0xa0a   :  { %1760 = vsyncpa [#allocation6], 1 }
 0xa0b   :  { %1761 = vsyncpa [#allocation9], 1 }
 0xa0c   :  { %1762 = vsyncpa [#allocation4], 1 }

</bundles_post_ra>
